<compile_context>
chip_gen: v6e
topology: v6e:2x2x1
jax: 0.10.0
libtpu: 0.0.40
codegen_flags: <defaults>
</compile_context>

<pallas_src>
from functools import partial

import jax
import jax.numpy as jnp
from jax.experimental import pallas as pl
from jax.experimental.pallas import tpu as pltpu

_TR_CAP = 256   # cap for the fused-row (B*C*H) tile
_TW_CAP = 128   # cap for the width tile


def _pick_tile(n: int, cap: int, quantum: int) -> int:
    """Largest tile <= cap that divides n and is a multiple of `quantum`;
    falls back to the full extent n (always a legal block size)."""
    if n <= cap:
        return n
    d = (min(cap, n) // quantum) * quantum
    while d >= quantum:
        if n % d == 0:
            return d
        d -= quantum
    return n


def _upsample_kernel(x_ref, eh_ref, ew_ref, o_ref):
    # x_ref:  (TR, tW)        slab of the fused (B*C*H, W) input
    # eh_ref: (s*TR, TR)      per-tile row-duplication matrix  Eh[p, r] = (p // s == r)
    # ew_ref: (tW, s*tW)      per-tile col-duplication matrix  Ew[w, q] = (w == q // s)
    # o_ref:  (s*TR, s*tW)    corresponding slab of the (s*B*C*H, s*W) output
    cdt = eh_ref.dtype
    x = x_ref[...].astype(cdt)                                            # (TR, tW)
    yh = jnp.dot(eh_ref[...], x, preferred_element_type=jnp.float32)      # rows duplicated
    yh = yh.astype(cdt)    # exact: every element is a single-term 1.0 * x sum
    y = jnp.dot(yh, ew_ref[...], preferred_element_type=jnp.float32)      # cols duplicated
    o_ref[...] = y.astype(o_ref.dtype)


@partial(jax.jit, static_argnames=("scale_factor",))
def upsample_nearest(x: jax.Array, scale_factor: int = 2) -> jax.Array:
    """Equivalent of the PyTorch `Upsample` module forward (NCHW, nearest neighbor)."""
    B, C, H, W = x.shape
    s = int(scale_factor)
    R = B * C * H                      # fused row axis; out row = s * in_row + di (exact)
    sH, sW = s * H, s * W

    tr = _pick_tile(R, _TR_CAP, 8)
    tw = _pick_tile(W, _TW_CAP, 128)

    # bf16-native MXU path for bf16 inputs; f32 otherwise (ints routed via f32:
    # exact up to 2**24, same caveat as the reference formulation).
    compute_dtype = jnp.bfloat16 if x.dtype == jnp.bfloat16 else jnp.float32

    # Per-tile 0/1 expansion matrices (tile-local blocks of the block-diagonal
    # global duplication operators). Tiny and constant across the grid.
    eh = (jnp.arange(s * tr)[:, None] // s == jnp.arange(tr)[None, :]).astype(compute_dtype)
    ew = (jnp.arange(tw)[:, None] == (jnp.arange(s * tw)[None, :] // s)).astype(compute_dtype)

    x2 = x.reshape(R, W)               # free (contiguous) reshape

    grid = (R // tr, W // tw)
    grid_spec = pltpu.PrefetchScalarGridSpec(
        num_scalar_prefetch=0,
        grid=grid,
        in_specs=[
            pl.BlockSpec((tr, tw), lambda i, j: (i, j)),
            pl.BlockSpec((s * tr, tr), lambda i, j: (0, 0)),   # constant index -> fetched once
            pl.BlockSpec((tw, s * tw), lambda i, j: (0, 0)),   # constant index -> fetched once
        ],
        out_specs=pl.BlockSpec((s * tr, s * tw), lambda i, j: (i, j)),
    )

    y2 = pl.pallas_call(
        _upsample_kernel,
        out_shape=jax.ShapeDtypeStruct((s * R, sW), x.dtype),
        grid_spec=grid_spec,
        compiler_params=pltpu.CompilerParams(
            dimension_semantics=("parallel", "parallel"),
            vmem_limit_bytes=32 * 1024 * 1024,
        ),
    )(x2, eh, ew)

    return y2.reshape(B, C, sH, sW)    # free (contiguous) reshape back to NCHW


if __name__ == "__main__":
    key = jax.random.PRNGKey(0)
    B, C, H, W = 2, 4, 16, 16
    scale = 2

    x = jax.random.normal(key, (B, C, H, W), dtype=jnp.float32)

    y = upsample_nearest(x, scale_factor=scale)
    y = jax.block_until_ready(y)

    # Reference: same semantics as the PyTorch module (nearest, scale_factor=2).
    y_ref = jnp.repeat(jnp.repeat(x, scale, axis=2), scale, axis=3)

    assert y.shape == (B, C, scale * H, scale * W), y.shape
    assert y.dtype == x.dtype
    assert jnp.array_equal(y, y_ref), "mismatch vs reference"

    print("KERNEL_OK")
</pallas_src>

<mosaic_0001>
module attributes {stable_mosaic.version = 11 : i64} {
  func.func @_upsample_kernel(%arg0: i32, %arg1: i32, %arg2: memref<128x16xf32, #tpu.memory_space<vmem>>, %arg3: memref<256x128xf32, #tpu.memory_space<vmem>>, %arg4: memref<16x32xf32, #tpu.memory_space<vmem>>, %arg5: memref<256x32xf32, #tpu.memory_space<vmem>>) attributes {dimension_semantics = [#tpu.dimension_semantics<parallel>, #tpu.dimension_semantics<parallel>], iteration_bounds = array<i64: 1, 1>, scalar_prefetch = 0 : i64, scratch_operands = 0 : i64, tpu.core_type = #tpu.core_type<tc>, window_params = [{transform_indices = @transform_0, window_bounds = array<i64: 128, 16>}, {pipeline_mode = #tpu.pipeline_mode<synchronous>, transform_indices = @transform_1, window_bounds = array<i64: 256, 128>}, {pipeline_mode = #tpu.pipeline_mode<synchronous>, transform_indices = @transform_2, window_bounds = array<i64: 16, 32>}, {transform_indices = @transform_3, window_bounds = array<i64: 256, 32>}]} {
    %c0 = arith.constant 0 : index
    %c0_0 = arith.constant 0 : index
    %0 = vector.load %arg2[%c0, %c0_0] : memref<128x16xf32, #tpu.memory_space<vmem>>, vector<128x16xf32>
    %c0_1 = arith.constant 0 : index
    %c0_2 = arith.constant 0 : index
    %1 = vector.load %arg3[%c0_1, %c0_2] : memref<256x128xf32, #tpu.memory_space<vmem>>, vector<256x128xf32>
    %cst = arith.constant dense<0.000000e+00> : vector<256x16xf32>
    %2 = tpu.matmul %1, %0, %cst {dimension_numbers = #tpu.dot_dimension_numbers<[1], [0], [0], [1], [0, 0, 1, 1], [], []>} : vector<256x128xf32>, vector<128x16xf32>, vector<256x16xf32> -> vector<256x16xf32>
    %c0_3 = arith.constant 0 : index
    %c0_4 = arith.constant 0 : index
    %3 = vector.load %arg4[%c0_3, %c0_4] : memref<16x32xf32, #tpu.memory_space<vmem>>, vector<16x32xf32>
    %cst_5 = arith.constant dense<0.000000e+00> : vector<256x32xf32>
    %4 = tpu.matmul %2, %3, %cst_5 {dimension_numbers = #tpu.dot_dimension_numbers<[1], [0], [0], [1], [0, 0, 1, 1], [], []>} : vector<256x16xf32>, vector<16x32xf32>, vector<256x32xf32> -> vector<256x32xf32>
    %c0_6 = arith.constant 0 : index
    %c0_7 = arith.constant 0 : index
    %5 = vector.load %arg5[%c0_6, %c0_7] : memref<256x32xf32, #tpu.memory_space<vmem>>, vector<256x32xf32>
    tpu.vector_store %arg5[%c0_6, %c0_7], %4 {strides = array<i32>} : memref<256x32xf32, #tpu.memory_space<vmem>>, vector<256x32xf32>,
    return
  }
  func.func @transform_0(%arg0: i32, %arg1: i32) -> (i32, i32) {
    %c0_i32 = arith.constant 0 : i32
    return %arg0, %arg1 : i32, i32
  }
  func.func @transform_1(%arg0: i32, %arg1: i32) -> (i32, i32) {
    %c0_i32 = arith.constant 0 : i32
    %c0_i32_0 = arith.constant 0 : i32
    %c0_i32_1 = arith.constant 0 : i32
    return %c0_i32, %c0_i32_0 : i32, i32
  }
  func.func @transform_2(%arg0: i32, %arg1: i32) -> (i32, i32) {
    %c0_i32 = arith.constant 0 : i32
    %c0_i32_0 = arith.constant 0 : i32
    %c0_i32_1 = arith.constant 0 : i32
    return %c0_i32, %c0_i32_0 : i32, i32
  }
  func.func @transform_3(%arg0: i32, %arg1: i32) -> (i32, i32) {
    %c0_i32 = arith.constant 0 : i32
    return %arg0, %arg1 : i32, i32
  }
}

</mosaic_0001>

<bundles_post_ra>
// kernel: upsample_nearest.1
= control target key start
LH: loop header
LB: loop body
LE: loop exit
PB: predicated region body
PF: predicated region fallthrough
CT: control target
= control target key end

     0   :  { %s1172_s0 = inlined_call_operand.vmem [shape: f32[128,16], index: 0, kind: input, shape index: {}]   ;;  %s1173_s1 = inlined_call_operand.vmem [shape: f32[256,128], index: 1, kind: input, shape index: {}]   ;;  %s1174_s2 = inlined_call_operand.vmem [shape: f32[16,32], index: 2, kind: input, shape index: {}]   ;;  %s1175_s3 = inlined_call_operand.hbm [shape: f32[256,32], index: 3, kind: output, shape index: {}]  }
   0x1   :  { %v30_v0 = vld [vmem:[%s1172_s0 + $0x78] sm:$0xff]  ;;  %v29_v1 = vld [vmem:[%s1172_s0 + $0x70] sm:$0xff]  ;;  %v28_v2 = vld [vmem:[%s1172_s0 + $0x68] sm:$0xff] }
   0x2   :  { %775 = vmatprep.subr.mxu0 %v30_v0  ;;  %v27_v3 = vld [vmem:[%s1172_s0 + $0x60] sm:$0xff]  ;;  %v26_v5 = vld [vmem:[%s1172_s0 + $0x58] sm:$0xff]  ;;  %v25_v6 = vld [vmem:[%s1172_s0 + $0x50] sm:$0xff] }
   0x3   :  { %776 = vmatpush3.msra.mxu0 %v30_v0  ;;  %v31_v4 = vld [vmem:[%s1173_s1] sm:$0xff]  ;;  %v24_v7 = vld [vmem:[%s1172_s0 + $0x48] sm:$0xff]  ;;  %v22_v9 = vld [vmem:[%s1172_s0 + $0x38] sm:$0xff] }
   0x4   :  { %777 = vmatprep.subr.mxu0 %v29_v1  ;;  %807 = vmatprep.mubr.f32.mxu0 %v31_v4  ;;  %v23_v8 = vld [vmem:[%s1172_s0 + $0x40] sm:$0xff]  ;;  %v21_v10 = vld [vmem:[%s1172_s0 + $0x30] sm:$0xff] }
   0x5   :  { %778 = vmatpush3.msra.mxu0 %v29_v1 }
   0x6   :  { %779 = vmatprep.subr.mxu0 %v28_v2 }
   0x7   :  { %780 = vmatpush3.msra.mxu0 %v28_v2 }
   0x8   :  { %781 = vmatprep.subr.mxu0 %v27_v3 }
   0x9   :  { %782 = vmatpush3.msra.mxu0 %v27_v3 }
   0xa   :  { %783 = vmatprep.subr.mxu0 %v26_v5 }
   0xb   :  { %784 = vmatpush3.msra.mxu0 %v26_v5 }
   0xc   :  { %785 = vmatprep.subr.mxu0 %v25_v6 }
   0xd   :  { %786 = vmatpush3.msra.mxu0 %v25_v6 }
   0xe   :  { %787 = vmatprep.subr.mxu0 %v24_v7 }
   0xf   :  { %788 = vmatpush3.msra.mxu0 %v24_v7 }
  0x10   :  { %789 = vmatprep.subr.mxu0 %v23_v8 }
  0x11   :  { %790 = vmatpush3.msra.mxu0 %v23_v8 }
  0x12   :  { %8 = vsyncpa [#allocation3], 0  ;;  %791 = vmatprep.subr.mxu0 %v22_v9  ;;  %v20_v11 = vld [vmem:[%s1172_s0 + $0x28] sm:$0xff]  ;;  %v19_v12 = vld [vmem:[%s1172_s0 + $0x20] sm:$0xff]  ;;  %vm290_vm0 = vcmask 130048   ;;  %vm612_vm1 = vcmask 261120  }
  0x13   :  { %792 = vmatpush3.msra.mxu0 %v22_v9  ;;  %v18_v13 = vld [vmem:[%s1172_s0 + $0x18] sm:$0xff]  ;;  %v17_v14 = vld [vmem:[%s1172_s0 + $0x10] sm:$0xff]  ;;  %v16_v15 = vld [vmem:[%s1172_s0 + $0x8] sm:$0xff] }
  0x14   :  { %793 = vmatprep.subr.mxu0 %v21_v10  ;;  %v15_v16 = vld [vmem:[%s1172_s0] sm:$0xff]  ;;  %v32_v17 = vld [vmem:[%s1173_s1 + $0x8] sm:$0xff]  ;;  %v33_v18 = vld [vmem:[%s1173_s1 + $0x10] sm:$0xff] }
  0x15   :  { %794 = vmatpush3.msra.mxu0 %v21_v10  ;;  %v34_v19 = vld [vmem:[%s1173_s1 + $0x18] sm:$0xff]  ;;  %v35_v20 = vld [vmem:[%s1173_s1 + $0x20] sm:$0xff]  ;;  %v36_v21 = vld [vmem:[%s1173_s1 + $0x28] sm:$0xff] }
  0x16   :  { %795 = vmatprep.subr.mxu0 %v20_v11  ;;  %v37_v22 = vld [vmem:[%s1173_s1 + $0x30] sm:$0xff]  ;;  %v38_v23 = vld [vmem:[%s1173_s1 + $0x38] sm:$0xff]  ;;  %v39_v24 = vld [vmem:[%s1173_s1 + $0x40] sm:$0xff] }
  0x17   :  { %796 = vmatpush3.msra.mxu0 %v20_v11  ;;  %v40_v25 = vld [vmem:[%s1173_s1 + $0x48] sm:$0xff]  ;;  %v41_v26 = vld [vmem:[%s1173_s1 + $0x50] sm:$0xff]  ;;  %v42_v27 = vld [vmem:[%s1173_s1 + $0x58] sm:$0xff] }
  0x18   :  { %797 = vmatprep.subr.mxu0 %v19_v12  ;;  %v43_v28 = vld [vmem:[%s1173_s1 + $0x60] sm:$0xff]  ;;  %v44_v29 = vld [vmem:[%s1173_s1 + $0x68] sm:$0xff]  ;;  %v45_v30 = vld [vmem:[%s1173_s1 + $0x70] sm:$0xff] }
  0x19   :  { %798 = vmatpush3.msra.mxu0 %v19_v12  ;;  %v46_v31 = vld [vmem:[%s1173_s1 + $0x78] sm:$0xff]  ;;  %v47_v32 = vld [vmem:[%s1173_s1 + $0x80] sm:$0xff]  ;;  %v48_v33 = vld [vmem:[%s1173_s1 + $0x88] sm:$0xff] }
  0x1a   :  { %799 = vmatprep.subr.mxu0 %v18_v13  ;;  %v49_v34 = vld [vmem:[%s1173_s1 + $0x90] sm:$0xff]  ;;  %v50_v35 = vld [vmem:[%s1173_s1 + $0x98] sm:$0xff]  ;;  %v51_v36 = vld [vmem:[%s1173_s1 + $0xa0] sm:$0xff] }
  0x1b   :  { %800 = vmatpush3.msra.mxu0 %v18_v13  ;;  %v52_v37 = vld [vmem:[%s1173_s1 + $0xa8] sm:$0xff]  ;;  %v53_v38 = vld [vmem:[%s1173_s1 + $0xb0] sm:$0xff]  ;;  %v54_v39 = vld [vmem:[%s1173_s1 + $0xb8] sm:$0xff] }
  0x1c   :  { %801 = vmatprep.subr.mxu0 %v17_v14  ;;  %v55_v40 = vld [vmem:[%s1173_s1 + $0xc0] sm:$0xff]  ;;  %v56_v41 = vld [vmem:[%s1173_s1 + $0xc8] sm:$0xff]  ;;  %v57_v42 = vld [vmem:[%s1173_s1 + $0xd0] sm:$0xff] }
  0x1d   :  { %802 = vmatpush3.msra.mxu0 %v17_v14  ;;  %v58_v43 = vld [vmem:[%s1173_s1 + $0xd8] sm:$0xff]  ;;  %v59_v44 = vld [vmem:[%s1173_s1 + $0xe0] sm:$0xff]  ;;  %v60_v45 = vld [vmem:[%s1173_s1 + $0xe8] sm:$0xff] }
  0x1e   :  { %803 = vmatprep.subr.mxu0 %v16_v15  ;;  %v61_v46 = vld [vmem:[%s1173_s1 + $0xf0] sm:$0xff]  ;;  %v62_v47 = vld [vmem:[%s1173_s1 + $0xf8] sm:$0xff]  ;;  %v289_v48 = vld [vmem:[%s1174_s2 + $0x8] sm:$0xff]  ;;  %s932_s1 = smov [#allocation2]  }
  0x1f   :  { %804 = vmatpush3.msra.mxu0 %v16_v15  ;;  %855 = vmatprep.subr.mxu1 %v289_v48  ;;  %v288_v49 = vld [vmem:[%s1174_s2] sm:$0xff]  ;;  %s650_s2 = sshll.u32 %s932_s1, 4  ;;  %s651_s2 = int_to_ptr.vmem [resolvable:$true] %s650_s2 }
  0x20   :  { %805 = vmatprep.subr.mxu0 %v15_v16  ;;  %856 = vmatpush3.msra.mxu1 %v289_v48  ;;  %s910_s28 = scalar_lea.vmem %s651_s2, 4096  ;;  %p915_p1 = scmp.lt.s32.totalorder %s651_s2, %s651_s2 }
  0x21   :  { %806 = vmatpush3.msra.mxu0 %v15_v16  ;;  %857 = vmatprep.subr.mxu1 %v288_v49  ;;  %p911_p0 = scmp.ne.s32.totalorder %s651_s2, %s910_s28  ;;  %p916_p2 = scmp.lt.s32.totalorder %s910_s28, %s910_s28 }
  0x22   :  { %808 = vmatmul.mubr.f32.vlgmr.msra.gmra.mxu0 %v32_v17  ;;  %858 = vmatpush3.msra.mxu1 %v288_v49 }
  0x23   :  { %810 = vmatprep.mubr.f32.mxu0 %v33_v18  ;;  %p917_p3 = por %p916_p2, %p915_p1 }
  0x25   :  { %p918_p4 = pnand %p917_p3, %p911_p0 }
  0x26   :  { %811 = vmatmul.mubr.f32.gmra.mxu0 %v34_v19 }
  0x27   :  { %813 = vmatprep.mubr.f32.mxu0 %v35_v20 }
  0x2a   :  { %814 = vmatmul.mubr.f32.gmra.mxu0 %v36_v21 }
  0x2b   :  { %816 = vmatprep.mubr.f32.mxu0 %v37_v22 }
  0x2e   :  { %817 = vmatmul.mubr.f32.gmra.mxu0 %v38_v23 }
  0x2f   :  { %819 = vmatprep.mubr.f32.mxu0 %v39_v24 }
  0x32   :  { %820 = vmatmul.mubr.f32.gmra.mxu0 %v40_v25 }
  0x33   :  { %822 = vmatprep.mubr.f32.mxu0 %v41_v26 }
  0x36   :  { %823 = vmatmul.mubr.f32.gmra.mxu0 %v42_v27 }
  0x37   :  { %825 = vmatprep.mubr.f32.mxu0 %v43_v28 }
  0x3a   :  { %826 = vmatmul.mubr.f32.gmra.mxu0 %v44_v29 }
  0x3b   :  { %828 = vmatprep.mubr.f32.mxu0 %v45_v30 }
  0x3e   :  { %829 = vmatmul.mubr.f32.gmra.mxu0 %v46_v31 }
  0x3f   :  { %831 = vmatprep.mubr.f32.mxu0 %v47_v32 }
  0x42   :  { %832 = vmatmul.mubr.f32.gmra.mxu0 %v48_v33 }
  0x43   :  { %834 = vmatprep.mubr.f32.mxu0 %v49_v34 }
  0x46   :  { %835 = vmatmul.mubr.f32.gmra.mxu0 %v50_v35 }
  0x47   :  { %837 = vmatprep.mubr.f32.mxu0 %v51_v36 }
  0x4a   :  { %838 = vmatmul.mubr.f32.gmra.mxu0 %v52_v37 }
  0x4b   :  { %840 = vmatprep.mubr.f32.mxu0 %v53_v38 }
  0x4e   :  { %841 = vmatmul.mubr.f32.gmra.mxu0 %v54_v39 }
  0x4f   :  { %843 = vmatprep.mubr.f32.mxu0 %v55_v40 }
  0x52   :  { %844 = vmatmul.mubr.f32.gmra.mxu0 %v56_v41 }
  0x53   :  { %846 = vmatprep.mubr.f32.mxu0 %v57_v42 }
  0x56   :  { %847 = vmatmul.mubr.f32.gmra.mxu0 %v58_v43 }
  0x57   :  { %849 = vmatprep.mubr.f32.mxu0 %v59_v44 }
  0x5a   :  { %850 = vmatmul.mubr.f32.gmra.mxu0 %v60_v45 }
  0x5b   :  { %852 = vmatprep.mubr.f32.mxu0 %v61_v46 }
  0x5e   :  { %853 = vmatmul.mubr.f32.gmra.mxu0 %v62_v47 }
  0xe2   :  { %v809_v50 = vpop.f32.mrf.mxu0 }
  0xe4   :  { %v129_v51 = vpop.f32.mrf.mxu0 }
  0xe5   :  { %859 = vmatprep.mubr.msk.f32.mxu1 %vm290_vm0, %v129_v51 }
  0xe6   :  { %v812_v52 = vpop.f32.mrf.mxu0  ;;  %860 = vmatmul.mubr.msk.f32.vlgmr.msra.gmra.mxu1 %vm290_vm0, %v809_v50 }
  0xe8   :  { %v139_v53 = vpop.f32.mrf.mxu0 }
  0xe9   :  { %862 = vmatprep.mubr.msk.f32.mxu1 %vm290_vm0, %v139_v53 }
  0xea   :  { %v815_v54 = vpop.f32.mrf.mxu0  ;;  %863 = vmatmul.mubr.msk.f32.gmra.mxu1 %vm290_vm0, %v812_v52 }
  0xec   :  { %v149_v55 = vpop.f32.mrf.mxu0 }
  0xed   :  { %865 = vmatprep.mubr.msk.f32.mxu1 %vm290_vm0, %v149_v55 }
  0xee   :  { %v818_v56 = vpop.f32.mrf.mxu0  ;;  %866 = vmatmul.mubr.msk.f32.gmra.mxu1 %vm290_vm0, %v815_v54 }
  0xf0   :  { %v159_v57 = vpop.f32.mrf.mxu0 }
  0xf1   :  { %868 = vmatprep.mubr.msk.f32.mxu1 %vm290_vm0, %v159_v57 }
  0xf2   :  { %v821_v58 = vpop.f32.mrf.mxu0  ;;  %869 = vmatmul.mubr.msk.f32.gmra.mxu1 %vm290_vm0, %v818_v56 }
  0xf4   :  { %v169_v59 = vpop.f32.mrf.mxu0 }
  0xf5   :  { %871 = vmatprep.mubr.msk.f32.mxu1 %vm290_vm0, %v169_v59 }
  0xf6   :  { %v824_v60 = vpop.f32.mrf.mxu0  ;;  %872 = vmatmul.mubr.msk.f32.gmra.mxu1 %vm290_vm0, %v821_v58 }
  0xf8   :  { %v179_v61 = vpop.f32.mrf.mxu0 }
  0xf9   :  { %874 = vmatprep.mubr.msk.f32.mxu1 %vm290_vm0, %v179_v61 }
  0xfa   :  { %v827_v62 = vpop.f32.mrf.mxu0  ;;  %875 = vmatmul.mubr.msk.f32.gmra.mxu1 %vm290_vm0, %v824_v60 }
  0xfc   :  { %v189_v63 = vpop.f32.mrf.mxu0 }
  0xfd   :  { %877 = vmatprep.mubr.msk.f32.mxu1 %vm290_vm0, %v189_v63 }
  0xfe   :  { %v830_v0 = vpop.f32.mrf.mxu0  ;;  %878 = vmatmul.mubr.msk.f32.gmra.mxu1 %vm290_vm0, %v827_v62 }
 0x100   :  { %v199_v1 = vpop.f32.mrf.mxu0 }
 0x101   :  { %880 = vmatprep.mubr.msk.f32.mxu1 %vm290_vm0, %v199_v1 }
 0x102   :  { %v833_v2 = vpop.f32.mrf.mxu0  ;;  %881 = vmatmul.mubr.msk.f32.gmra.mxu1 %vm290_vm0, %v830_v0 }
 0x104   :  { %v209_v3 = vpop.f32.mrf.mxu0 }
 0x105   :  { %883 = vmatprep.mubr.msk.f32.mxu1 %vm290_vm0, %v209_v3 }
 0x106   :  { %v836_v4 = vpop.f32.mrf.mxu0  ;;  %884 = vmatmul.mubr.msk.f32.gmra.mxu1 %vm290_vm0, %v833_v2 }
 0x108   :  { %v219_v5 = vpop.f32.mrf.mxu0 }
 0x109   :  { %886 = vmatprep.mubr.msk.f32.mxu1 %vm290_vm0, %v219_v5 }
 0x10a   :  { %v839_v6 = vpop.f32.mrf.mxu0  ;;  %887 = vmatmul.mubr.msk.f32.gmra.mxu1 %vm290_vm0, %v836_v4 }
 0x10c   :  { %v229_v7 = vpop.f32.mrf.mxu0 }
 0x10d   :  { %889 = vmatprep.mubr.msk.f32.mxu1 %vm290_vm0, %v229_v7 }
 0x10e   :  { %v842_v8 = vpop.f32.mrf.mxu0  ;;  %890 = vmatmul.mubr.msk.f32.gmra.mxu1 %vm290_vm0, %v839_v6 }
 0x110   :  { %v239_v9 = vpop.f32.mrf.mxu0 }
 0x111   :  { %892 = vmatprep.mubr.msk.f32.mxu1 %vm290_vm0, %v239_v9 }
 0x112   :  { %v845_v10 = vpop.f32.mrf.mxu0  ;;  %893 = vmatmul.mubr.msk.f32.gmra.mxu1 %vm290_vm0, %v842_v8 }
 0x114   :  { %v249_v11 = vpop.f32.mrf.mxu0 }
 0x115   :  { %895 = vmatprep.mubr.msk.f32.mxu1 %vm290_vm0, %v249_v11 }
 0x116   :  { %v848_v12 = vpop.f32.mrf.mxu0  ;;  %896 = vmatmul.mubr.msk.f32.gmra.mxu1 %vm290_vm0, %v845_v10 }
 0x118   :  { %v259_v13 = vpop.f32.mrf.mxu0 }
 0x119   :  { %898 = vmatprep.mubr.msk.f32.mxu1 %vm290_vm0, %v259_v13 }
 0x11a   :  { %v851_v14 = vpop.f32.mrf.mxu0  ;;  %899 = vmatmul.mubr.msk.f32.gmra.mxu1 %vm290_vm0, %v848_v12 }
 0x11c   :  { %v269_v15 = vpop.f32.mrf.mxu0 }
 0x11d   :  { %901 = vmatprep.mubr.msk.f32.mxu1 %vm290_vm0, %v269_v15 }
 0x11e   :  { %v854_v16 = vpop.f32.mrf.mxu0  ;;  %902 = vmatmul.mubr.msk.f32.gmra.mxu1 %vm290_vm0, %v851_v14 }
 0x120   :  { %v279_v17 = vpop.f32.mrf.mxu0 }
 0x121   :  { %904 = vmatprep.mubr.msk.f32.mxu1 %vm290_vm0, %v279_v17 }
 0x122   :  { %905 = vmatmul.mubr.msk.f32.gmra.mxu1 %vm290_vm0, %v854_v16 }
 0x1a6   :  { %v861_v18 = vpop.f32.mrf.mxu1 }
 0x1a7   :  { %614 = vst.msk [vmem:[#allocation2 + $0x8] sm:$0xff] %vm612_vm1, %v861_v18 }
 0x1a8   :  { %v453_v19 = vpop.f32.mrf.mxu1 }
 0x1a9   :  { %613 = vst.msk [vmem:[#allocation2] sm:$0xff] %vm612_vm1, %v453_v19 }
 0x1aa   :  { %v864_v20 = vpop.f32.mrf.mxu1 }
 0x1ab   :  { %616 = vst.msk [vmem:[#allocation2 + $0x18] sm:$0xff] %vm612_vm1, %v864_v20 }
 0x1ac   :  { %v463_v21 = vpop.f32.mrf.mxu1 }
 0x1ad   :  { %615 = vst.msk [vmem:[#allocation2 + $0x10] sm:$0xff] %vm612_vm1, %v463_v21 }
 0x1ae   :  { %v867_v22 = vpop.f32.mrf.mxu1 }
 0x1af   :  { %618 = vst.msk [vmem:[#allocation2 + $0x28] sm:$0xff] %vm612_vm1, %v867_v22 }
 0x1b0   :  { %v473_v23 = vpop.f32.mrf.mxu1 }
 0x1b1   :  { %617 = vst.msk [vmem:[#allocation2 + $0x20] sm:$0xff] %vm612_vm1, %v473_v23 }
 0x1b2   :  { %v870_v24 = vpop.f32.mrf.mxu1 }
 0x1b3   :  { %620 = vst.msk [vmem:[#allocation2 + $0x38] sm:$0xff] %vm612_vm1, %v870_v24 }
 0x1b4   :  { %v483_v25 = vpop.f32.mrf.mxu1 }
 0x1b5   :  { %619 = vst.msk [vmem:[#allocation2 + $0x30] sm:$0xff] %vm612_vm1, %v483_v25 }
 0x1b6   :  { %v873_v26 = vpop.f32.mrf.mxu1 }
 0x1b7   :  { %622 = vst.msk [vmem:[#allocation2 + $0x48] sm:$0xff] %vm612_vm1, %v873_v26 }
 0x1b8   :  { %v493_v27 = vpop.f32.mrf.mxu1 }
 0x1b9   :  { %621 = vst.msk [vmem:[#allocation2 + $0x40] sm:$0xff] %vm612_vm1, %v493_v27 }
 0x1ba   :  { %v876_v28 = vpop.f32.mrf.mxu1 }
 0x1bb   :  { %624 = vst.msk [vmem:[#allocation2 + $0x58] sm:$0xff] %vm612_vm1, %v876_v28 }
 0x1bc   :  { %v503_v29 = vpop.f32.mrf.mxu1 }
 0x1bd   :  { %623 = vst.msk [vmem:[#allocation2 + $0x50] sm:$0xff] %vm612_vm1, %v503_v29 }
 0x1be   :  { %v879_v30 = vpop.f32.mrf.mxu1 }
 0x1bf   :  { %626 = vst.msk [vmem:[#allocation2 + $0x68] sm:$0xff] %vm612_vm1, %v879_v30 }
 0x1c0   :  { %v513_v31 = vpop.f32.mrf.mxu1 }
 0x1c1   :  { %625 = vst.msk [vmem:[#allocation2 + $0x60] sm:$0xff] %vm612_vm1, %v513_v31 }
 0x1c2   :  { %v882_v32 = vpop.f32.mrf.mxu1 }
 0x1c3   :  { %628 = vst.msk [vmem:[#allocation2 + $0x78] sm:$0xff] %vm612_vm1, %v882_v32 }
 0x1c4   :  { %v523_v33 = vpop.f32.mrf.mxu1 }
 0x1c5   :  { %627 = vst.msk [vmem:[#allocation2 + $0x70] sm:$0xff] %vm612_vm1, %v523_v33 }
 0x1c6   :  { %v885_v34 = vpop.f32.mrf.mxu1 }
 0x1c7   :  { %630 = vst.msk [vmem:[#allocation2 + $0x88] sm:$0xff] %vm612_vm1, %v885_v34 }
 0x1c8   :  { %v533_v35 = vpop.f32.mrf.mxu1 }
 0x1c9   :  { %629 = vst.msk [vmem:[#allocation2 + $0x80] sm:$0xff] %vm612_vm1, %v533_v35 }
 0x1ca   :  { %v888_v36 = vpop.f32.mrf.mxu1 }
 0x1cb   :  { %632 = vst.msk [vmem:[#allocation2 + $0x98] sm:$0xff] %vm612_vm1, %v888_v36 }
 0x1cc   :  { %v543_v37 = vpop.f32.mrf.mxu1 }
 0x1cd   :  { %631 = vst.msk [vmem:[#allocation2 + $0x90] sm:$0xff] %vm612_vm1, %v543_v37 }
 0x1ce   :  { %v891_v38 = vpop.f32.mrf.mxu1 }
 0x1cf   :  { %634 = vst.msk [vmem:[#allocation2 + $0xa8] sm:$0xff] %vm612_vm1, %v891_v38 }
 0x1d0   :  { %v553_v39 = vpop.f32.mrf.mxu1 }
 0x1d1   :  { %633 = vst.msk [vmem:[#allocation2 + $0xa0] sm:$0xff] %vm612_vm1, %v553_v39 }
 0x1d2   :  { %v894_v40 = vpop.f32.mrf.mxu1 }
 0x1d3   :  { %636 = vst.msk [vmem:[#allocation2 + $0xb8] sm:$0xff] %vm612_vm1, %v894_v40 }
 0x1d4   :  { %v563_v41 = vpop.f32.mrf.mxu1 }
 0x1d5   :  { %635 = vst.msk [vmem:[#allocation2 + $0xb0] sm:$0xff] %vm612_vm1, %v563_v41 }
 0x1d6   :  { %v897_v42 = vpop.f32.mrf.mxu1 }
 0x1d7   :  { %638 = vst.msk [vmem:[#allocation2 + $0xc8] sm:$0xff] %vm612_vm1, %v897_v42 }
 0x1d8   :  { %v573_v43 = vpop.f32.mrf.mxu1 }
 0x1d9   :  { %637 = vst.msk [vmem:[#allocation2 + $0xc0] sm:$0xff] %vm612_vm1, %v573_v43 }
 0x1da   :  { %v900_v44 = vpop.f32.mrf.mxu1 }
 0x1db   :  { %640 = vst.msk [vmem:[#allocation2 + $0xd8] sm:$0xff] %vm612_vm1, %v900_v44 }
 0x1dc   :  { %v583_v45 = vpop.f32.mrf.mxu1 }
 0x1dd   :  { %639 = vst.msk [vmem:[#allocation2 + $0xd0] sm:$0xff] %vm612_vm1, %v583_v45 }
 0x1de   :  { %v903_v46 = vpop.f32.mrf.mxu1 }
 0x1df   :  { %642 = vst.msk [vmem:[#allocation2 + $0xe8] sm:$0xff] %vm612_vm1, %v903_v46 }
 0x1e0   :  { %v593_v47 = vpop.f32.mrf.mxu1 }
 0x1e1   :  { %641 = vst.msk [vmem:[#allocation2 + $0xe0] sm:$0xff] %vm612_vm1, %v593_v47 }
 0x1e2   :  { %v906_v48 = vpop.f32.mrf.mxu1 }
 0x1e3   :  { %644 = vst.msk [vmem:[#allocation2 + $0xf8] sm:$0xff] %vm612_vm1, %v906_v48 }
 0x1e4   :  { %v603_v49 = vpop.f32.mrf.mxu1 }
 0x1e5   :  { %643 = vst.msk [vmem:[#allocation2 + $0xf0] sm:$0xff] %vm612_vm1, %v603_v49 }
 0x1e6   :  { %921 = shalt.err (!%p918_p4)
}
 0x1e7   :  { %s933_s29 = smov 128   ;;  %s934_s30 = smov 8  }
 0x1e8   :  { %656 = dma.vmem_to_hbm [thread:$0]  %s651_s2, 4096, %s1175_s3, [#allocation3], %s933_s29, %s933_s29, %s934_s30  }
 0x1e9   :  { %930 = dma.done.wait [#allocation3], 4096  }
 0x1ea   :  { %931 = vsyncadd [#allocation3], 4294963200 }
 0x1eb   :  { %660 = vsyncpa [#allocation3], 1 }

</bundles_post_ra>
